<compile_context>
chip_gen: v5e
topology: v5e:2x2
jax: 0.10.0
libtpu: 0.0.40
codegen_flags: <defaults>
</compile_context>

<pallas_src>
import functools

import jax
import jax.numpy as jnp
from jax.experimental import pallas as pl
from jax.experimental.pallas import tpu as pltpu


def channel_attention_kernel(x_ref, w1t_ref, w2t_ref, o_ref, sum_acc, max_acc,
                             *, hw_total):
    # x_ref:   (Bt, C, HWt) block of the (B, C, H*W) input
    # w1t_ref: (C, Cr)  = fc1.weight^T
    # w2t_ref: (Cr, C)  = fc2.weight^T
    # o_ref:   (1, Bt, C) lane-dense gate output (resident across spatial axis)
    # sum_acc / max_acc: (Bt, C) f32 running-sum / running-max scratch
    k = pl.program_id(1)

    x = x_ref[...]
    # Accumulate the sum in f32 without materializing an f32 copy of the block;
    # max is exact in the native dtype, cast only the (Bt, C) partial.
    part_sum = jnp.sum(x, axis=-1, dtype=jnp.float32)      # (Bt, C)
    part_max = jnp.max(x, axis=-1).astype(jnp.float32)     # (Bt, C)

    @pl.when(k == 0)
    def _():
        sum_acc[...] = part_sum
        max_acc[...] = part_max

    @pl.when(k != 0)
    def _():
        sum_acc[...] = sum_acc[...] + part_sum
        max_acc[...] = jnp.maximum(max_acc[...], part_max)

    @pl.when(k == pl.num_programs(1) - 1)
    def _():
        bt = sum_acc.shape[0]
        avg = sum_acc[...] * (1.0 / hw_total)                     # true H*W divisor
        pooled = jnp.concatenate([avg, max_acc[...]], axis=0)     # (2*Bt, C)
        w1t = w1t_ref[...].astype(jnp.float32)                    # (C, Cr)
        w2t = w2t_ref[...].astype(jnp.float32)                    # (Cr, C)
        h = jnp.maximum(
            jnp.dot(pooled, w1t, preferred_element_type=jnp.float32), 0.0)  # (2*Bt, Cr)
        out = jnp.dot(h, w2t, preferred_element_type=jnp.float32)           # (2*Bt, C)
        gate = jax.nn.sigmoid(out[:bt] + out[bt:])                          # (Bt, C)
        o_ref[0] = gate.astype(o_ref.dtype)


def _divisors(n):
    return [d for d in range(1, n + 1) if n % d == 0]


def _choose_tiling(B, HW, itemsize, bill_fn, budget_bytes, min_hwt_bytes=2048):
    """Pick (Bt, HWt).

    * Bt only has to divide B (the output block is (1, Bt, C), so Bt is a full
      dim and any value is layout-legal).
    * HWt is either HW (preferred: one contiguous DMA per (b, c) row) or a
      divisor that is a multiple of 128; splits below the min_hwt_bytes floor
      are only used as a last resort (tiny strided DMA descriptors).
    * bill_fn(bt, hwt) is the honest per-step VMEM bill (all buffers/scratch).
    * Prefer leaving n_b >= 2 batch steps so both v7x TensorCores get work.
    """
    bts = sorted(_divisors(B), reverse=True)
    splits = [d for d in _divisors(HW) if d < HW and d % 128 == 0]
    hwts_pref = [HW] + sorted([d for d in splits if d * itemsize >= min_hwt_bytes],
                              reverse=True)
    hwts_small = sorted([d for d in splits if d * itemsize < min_hwt_bytes],
                        reverse=True)

    def pick(hwts):
        for hwt in hwts:
            fitting = [bt for bt in bts if bill_fn(bt, hwt) <= budget_bytes]
            if not fitting:
                continue
            multi = [bt for bt in fitting if B // bt >= 2]
            return (max(multi) if multi else max(fitting)), hwt
        return None

    choice = pick(hwts_pref) or pick(hwts_small)
    if choice is None:
        # Nothing fits the soft budget: smallest legal block; wrapper will
        # raise the compiler VMEM limit to cover it.
        choice = (1, min(splits) if splits else HW)
    return choice


def channel_attention_gate(x, w1, w2, *,
                           block_budget_bytes=None,
                           vmem_limit_bytes=None,
                           x_buffer_count=None):
    """x: (B, C, H, W); w1: (C//ratio, C); w2: (C, C//ratio). Returns (B, C) gate.

    Returning the lane-dense (B, C) gate lets the caller's `x * gate` pass be
    fused by XLA into the consumer instead of forcing an extra materialized
    (B, C, 1, 1) broadcastable tensor.
    """
    B, C, H, W = x.shape
    Cr = w1.shape[0]
    HW = H * W

    x2 = x.reshape(B, C, HW)
    w1t = jnp.transpose(w1)   # (C, Cr) -- free layout change at trace time
    w2t = jnp.transpose(w2)   # (Cr, C)

    x_itemsize = x.dtype.itemsize
    w_itemsize = w1.dtype.itemsize

    # --- Generation-aware VMEM limit -------------------------------------
    try:
        cap = int(getattr(pltpu.get_tpu_info(), "vmem_capacity_bytes"))
    except Exception:  # no hardware info (e.g. interpret mode): be conservative
        cap = None
    if vmem_limit_bytes is None:
        if cap is not None:
            # 96 MiB on 128 MiB parts (v5e/v6e), 48 MiB on 64 MiB parts (v7x).
            vmem_limit_bytes = int(cap * 0.75)
        else:
            vmem_limit_bytes = 32 * 1024 * 1024
    small_vmem = cap is not None and cap < 100 * 1024 * 1024   # v7x-like

    # --- Honest per-step VMEM bill ----------------------------------------
    def bill(bt, hwt, x_bufs):
        x_bytes = x_bufs * bt * C * hwt * x_itemsize            # pipelined x buffers
        w_bytes = 2 * (C * Cr + Cr * C) * w_itemsize            # both weights, 2 bufs
        scratch = 2 * bt * C * 4                                # f32 sum + max scratch
        out_bytes = 2 * bt * C * x.dtype.itemsize               # output block, 2 bufs
        return x_bytes + w_bytes + scratch + out_bytes

    budget = (block_budget_bytes if block_budget_bytes is not None
              else int(0.8 * vmem_limit_bytes))

    # Deeper x pipelining only where DMA/compute are comparable (v7x-like).
    x_bufs = x_buffer_count if x_buffer_count is not None else (3 if small_vmem else 2)
    tiling = _choose_tiling(B, HW, x_itemsize,
                            lambda bt, hwt: bill(bt, hwt, x_bufs), budget)
    if x_bufs > 2 and bill(tiling[0], tiling[1], x_bufs) > budget:
        x_bufs = 2
        tiling = _choose_tiling(B, HW, x_itemsize,
                                lambda bt, hwt: bill(bt, hwt, x_bufs), budget)

    Bt, HWt = tiling
    n_b = B // Bt
    n_hw = HW // HWt
    if n_b * n_hw < x_bufs:          # no point buffering deeper than the grid
        x_bufs = 2

    # If even the smallest legal block exceeds the limit, raise the limit
    # (capped at physical VMEM) rather than failing to compile.
    required = bill(Bt, HWt, x_bufs)
    if required > int(0.8 * vmem_limit_bytes):
        needed = int(required / 0.8) + (2 << 20)
        if cap is not None:
            needed = min(needed, cap)
        vmem_limit_bytes = max(vmem_limit_bytes, needed)

    kernel = functools.partial(channel_attention_kernel, hw_total=float(HW))

    bytes_accessed = (x2.size * x2.dtype.itemsize
                      + w1.size * w1.dtype.itemsize
                      + w2.size * w2.dtype.itemsize
                      + B * C * x.dtype.itemsize)
    cost = pl.CostEstimate(
        flops=int(3 * B * C * HW + 2 * (2 * B) * C * Cr * 2),
        transcendentals=int(B * C),
        bytes_accessed=int(bytes_accessed),
    )

    if x_bufs == 2:
        x_spec = pl.BlockSpec((Bt, C, HWt), lambda b, k: (b, 0, k))
    else:
        x_spec = pl.BlockSpec((Bt, C, HWt), lambda b, k: (b, 0, k),
                              pipeline_mode=pl.Buffered(x_bufs))

    out = pl.pallas_call(
        kernel,
        # (n_b, Bt, C): Bt and C are full dims of the output array, so the
        # (1, Bt, C) block is layout-legal for any Bt, keeping n_b >= 2
        # (megacore) possible even for small batches.
        out_shape=jax.ShapeDtypeStruct((n_b, Bt, C), x.dtype),
        grid_spec=pltpu.PrefetchScalarGridSpec(
            num_scalar_prefetch=0,
            grid=(n_b, n_hw),
            in_specs=[
                x_spec,
                pl.BlockSpec((C, Cr), lambda b, k: (0, 0)),
                pl.BlockSpec((Cr, C), lambda b, k: (0, 0)),
            ],
            out_specs=pl.BlockSpec((1, Bt, C), lambda b, k: (b, 0, 0)),
            scratch_shapes=[
                pltpu.VMEM((Bt, C), jnp.float32),   # running sum
                pltpu.VMEM((Bt, C), jnp.float32),   # running max
            ],
        ),
        compiler_params=pltpu.CompilerParams(
            dimension_semantics=("parallel", "arbitrary"),
            vmem_limit_bytes=int(vmem_limit_bytes),
        ),
        cost_estimate=cost,
    )(x2, w1t, w2t)

    return out.reshape(B, C)


def channel_attention(x, w1, w2, **kwargs):
    """Drop-in for the PyTorch module: returns the (B, C, 1, 1) sigmoid gate."""
    B, C = x.shape[0], x.shape[1]
    gate = channel_attention_gate(x, w1, w2, **kwargs)
    return gate.reshape(B, C, 1, 1)


def channel_attention_apply(x, w1, w2, **kwargs):
    """Gate applied to x (the usual consumer of this module); the broadcast
    multiply stays in XLA so it can fuse with whatever consumes it next."""
    B, C = x.shape[0], x.shape[1]
    gate = channel_attention_gate(x, w1, w2, **kwargs)
    return x * gate.reshape(B, C, 1, 1).astype(x.dtype)


def channel_attention_ref(x, w1, w2):
    # Pure-JAX reference (mirrors the PyTorch forward).
    avg = jnp.mean(x, axis=(2, 3))                 # (B, C)
    mx = jnp.max(x, axis=(2, 3))                   # (B, C)

    def mlp(v):
        h = jnp.maximum(v @ w1.T, 0.0)             # (B, Cr)
        return h @ w2.T                            # (B, C)

    out = jax.nn.sigmoid(mlp(avg) + mlp(mx))
    return out[:, :, None, None]


if __name__ == "__main__":
    B, C, H, W = 2, 64, 16, 16
    ratio = 16
    Cr = C // ratio                                # = 4

    key = jax.random.PRNGKey(0)
    kx, k1, k2 = jax.random.split(key, 3)

    x = jax.random.normal(kx, (B, C, H, W), dtype=jnp.float32)
    # Deterministic synthetic weights for the 1x1 convs (no bias).
    w1 = jax.random.normal(k1, (Cr, C), dtype=jnp.float32) * (1.0 / C ** 0.5)
    w2 = jax.random.normal(k2, (C, Cr), dtype=jnp.float32) * (1.0 / Cr ** 0.5)

    ref = channel_attention_ref(x, w1, w2)

    # 1) Default tiling (generation-aware budget; single spatial block,
    #    n_b = 2 so both TensorCores get a batch step on megacore parts).
    out = jax.block_until_ready(channel_attention(x, w1, w2))
    assert out.shape == (B, C, 1, 1)
    assert jnp.allclose(out, ref, atol=2e-5, rtol=2e-5), "mismatch vs reference"

    # 2) Force spatial tiling (tiny tiling budget only; compiler VMEM limit is
    #    untouched) to exercise the running sum/max accumulator + finalize path.
    out_tiled = jax.block_until_ready(
        channel_attention(x, w1, w2, block_budget_bytes=100 * 1024))
    assert jnp.allclose(out_tiled, ref, atol=2e-5, rtol=2e-5), \
        "mismatch vs reference (spatially tiled path)"

    print("KERNEL_OK")
</pallas_src>

<mosaic_0001>
module attributes {stable_mosaic.version = 11 : i64} {
  func.func @channel_attention_kernel(%arg0: i32, %arg1: i32, %arg2: memref<1x64x256xf32, #tpu.memory_space<vmem>>, %arg3: memref<64x4xf32, #tpu.memory_space<vmem>>, %arg4: memref<4x64xf32, #tpu.memory_space<vmem>>, %arg5: memref<1x1x64xf32, #tpu.memory_space<vmem>>, %arg6: memref<1x64xf32, #tpu.memory_space<vmem>>, %arg7: memref<1x64xf32, #tpu.memory_space<vmem>>) attributes {dimension_semantics = [#tpu.dimension_semantics<parallel>, #tpu.dimension_semantics<arbitrary>], iteration_bounds = array<i64: 2, 1>, scalar_prefetch = 0 : i64, scratch_operands = 2 : i64, tpu.core_type = #tpu.core_type<tc>, window_params = [{transform_indices = @transform_0, window_bounds = array<i64: 1, 64, 256>}, {pipeline_mode = #tpu.pipeline_mode<synchronous>, transform_indices = @transform_1, window_bounds = array<i64: 64, 4>}, {pipeline_mode = #tpu.pipeline_mode<synchronous>, transform_indices = @transform_2, window_bounds = array<i64: 4, 64>}, {transform_indices = @transform_3, window_bounds = array<i64: 1, 1, 64>}]} {
    %c0 = arith.constant 0 : index
    %c0_0 = arith.constant 0 : index
    %c0_1 = arith.constant 0 : index
    %0 = vector.load %arg2[%c0, %c0_0, %c0_1] : memref<1x64x256xf32, #tpu.memory_space<vmem>>, vector<1x64x256xf32>
    %cst = arith.constant dense<0.000000e+00> : vector<1x64xf32>
    %1 = vector.multi_reduction <add>, %0, %cst [2] : vector<1x64x256xf32> to vector<1x64xf32>
    %cst_2 = arith.constant dense<0xFF800000> : vector<1x64xf32>
    %2 = vector.multi_reduction <maximumf>, %0, %cst_2 [2] : vector<1x64x256xf32> to vector<1x64xf32>
    %c0_i32 = arith.constant 0 : i32
    %3 = arith.cmpi eq, %arg1, %c0_i32 : i32
    %4 = arith.extui %3 : i1 to i32
    %c0_i32_3 = arith.constant 0 : i32
    %5 = arith.cmpi ne, %4, %c0_i32_3 : i32
    scf.if %5 {
      %c0_8 = arith.constant 0 : index
      %c0_9 = arith.constant 0 : index
      %12 = vector.load %arg6[%c0_8, %c0_9] : memref<1x64xf32, #tpu.memory_space<vmem>>, vector<1x64xf32>
      tpu.vector_store %arg6[%c0_8, %c0_9], %1 {strides = array<i32>} : memref<1x64xf32, #tpu.memory_space<vmem>>, vector<1x64xf32>,
      %c0_10 = arith.constant 0 : index
      %c0_11 = arith.constant 0 : index
      %13 = vector.load %arg7[%c0_10, %c0_11] : memref<1x64xf32, #tpu.memory_space<vmem>>, vector<1x64xf32>
      tpu.vector_store %arg7[%c0_10, %c0_11], %2 {strides = array<i32>} : memref<1x64xf32, #tpu.memory_space<vmem>>, vector<1x64xf32>,
    } else {
    }
    %c0_i32_4 = arith.constant 0 : i32
    %6 = arith.cmpi ne, %arg1, %c0_i32_4 : i32
    %7 = arith.extui %6 : i1 to i32
    %c0_i32_5 = arith.constant 0 : i32
    %8 = arith.cmpi ne, %7, %c0_i32_5 : i32
    scf.if %8 {
      %c0_8 = arith.constant 0 : index
      %c0_9 = arith.constant 0 : index
      %12 = vector.load %arg6[%c0_8, %c0_9] : memref<1x64xf32, #tpu.memory_space<vmem>>, vector<1x64xf32>
      %13 = arith.addf %12, %1 : vector<1x64xf32>
      %c0_10 = arith.constant 0 : index
      %c0_11 = arith.constant 0 : index
      %14 = vector.load %arg6[%c0_10, %c0_11] : memref<1x64xf32, #tpu.memory_space<vmem>>, vector<1x64xf32>
      tpu.vector_store %arg6[%c0_10, %c0_11], %13 {strides = array<i32>} : memref<1x64xf32, #tpu.memory_space<vmem>>, vector<1x64xf32>,
      %c0_12 = arith.constant 0 : index
      %c0_13 = arith.constant 0 : index
      %15 = vector.load %arg7[%c0_12, %c0_13] : memref<1x64xf32, #tpu.memory_space<vmem>>, vector<1x64xf32>
      %16 = arith.maximumf %15, %2 : vector<1x64xf32>
      %c0_14 = arith.constant 0 : index
      %c0_15 = arith.constant 0 : index
      %17 = vector.load %arg7[%c0_14, %c0_15] : memref<1x64xf32, #tpu.memory_space<vmem>>, vector<1x64xf32>
      tpu.vector_store %arg7[%c0_14, %c0_15], %16 {strides = array<i32>} : memref<1x64xf32, #tpu.memory_space<vmem>>, vector<1x64xf32>,
    } else {
    }
    %c0_i32_6 = arith.constant 0 : i32
    %9 = arith.cmpi eq, %arg1, %c0_i32_6 : i32
    %10 = arith.extui %9 : i1 to i32
    %c0_i32_7 = arith.constant 0 : i32
    %11 = arith.cmpi ne, %10, %c0_i32_7 : i32
    scf.if %11 {
      %c0_8 = arith.constant 0 : index
      %c0_9 = arith.constant 0 : index
      %12 = vector.load %arg6[%c0_8, %c0_9] : memref<1x64xf32, #tpu.memory_space<vmem>>, vector<1x64xf32>
      %cst_10 = arith.constant 3.906250e-03 : f32
      %13 = vector.broadcast %cst_10 : f32 to vector<1x64xf32>
      %14 = arith.mulf %12, %13 : vector<1x64xf32>
      %c0_11 = arith.constant 0 : index
      %c0_12 = arith.constant 0 : index
      %15 = vector.load %arg7[%c0_11, %c0_12] : memref<1x64xf32, #tpu.memory_space<vmem>>, vector<1x64xf32>
      %16 = tpu.concatenate %14, %15 in 0 : vector<1x64xf32>, vector<1x64xf32> -> vector<2x64xf32>
      %c0_13 = arith.constant 0 : index
      %c0_14 = arith.constant 0 : index
      %17 = vector.load %arg3[%c0_13, %c0_14] : memref<64x4xf32, #tpu.memory_space<vmem>>, vector<64x4xf32>
      %c0_15 = arith.constant 0 : index
      %c0_16 = arith.constant 0 : index
      %18 = vector.load %arg4[%c0_15, %c0_16] : memref<4x64xf32, #tpu.memory_space<vmem>>, vector<4x64xf32>
      %cst_17 = arith.constant dense<0.000000e+00> : vector<2x4xf32>
      %19 = tpu.matmul %16, %17, %cst_17 {dimension_numbers = #tpu.dot_dimension_numbers<[1], [0], [0], [1], [0, 0, 1, 1], [], []>} : vector<2x64xf32>, vector<64x4xf32>, vector<2x4xf32> -> vector<2x4xf32>
      %cst_18 = arith.constant 0.000000e+00 : f32
      %20 = vector.broadcast %cst_18 : f32 to vector<2x4xf32>
      %21 = arith.maximumf %19, %20 : vector<2x4xf32>
      %cst_19 = arith.constant dense<0.000000e+00> : vector<2x64xf32>
      %22 = tpu.matmul %21, %18, %cst_19 {dimension_numbers = #tpu.dot_dimension_numbers<[1], [0], [0], [1], [0, 0, 1, 1], [], []>} : vector<2x4xf32>, vector<4x64xf32>, vector<2x64xf32> -> vector<2x64xf32>
      %23 = vector.extract_strided_slice %22 {offsets = [0, 0], sizes = [1, 64], strides = [1, 1]} : vector<2x64xf32> to vector<1x64xf32>
      %24 = vector.extract_strided_slice %22 {offsets = [1, 0], sizes = [1, 64], strides = [1, 1]} : vector<2x64xf32> to vector<1x64xf32>
      %25 = arith.addf %23, %24 : vector<1x64xf32>
      %26 = arith.negf %25 : vector<1x64xf32>
      %27 = math.exp %26 : vector<1x64xf32>
      %cst_20 = arith.constant 1.000000e+00 : f32
      %28 = vector.broadcast %cst_20 : f32 to vector<1x64xf32>
      %29 = arith.addf %28, %27 : vector<1x64xf32>
      %30 = arith.divf %28, %29 : vector<1x64xf32>
      %c0_21 = arith.constant 0 : index
      %c0_22 = arith.constant 0 : index
      %c0_23 = arith.constant 0 : index
      %31 = vector.load %arg5[%c0_21, %c0_22, %c0_23] : memref<1x1x64xf32, #tpu.memory_space<vmem>>, vector<1x1x64xf32>
      %32 = vector.shape_cast %31 : vector<1x1x64xf32> to vector<1x64xf32>
      %33 = vector.shape_cast %30 : vector<1x64xf32> to vector<1x1x64xf32>
      tpu.vector_store %arg5[%c0_21, %c0_22, %c0_23], %33 {strides = array<i32>} : memref<1x1x64xf32, #tpu.memory_space<vmem>>, vector<1x1x64xf32>,
    } else {
    }
    return
  }
  func.func @transform_0(%arg0: i32, %arg1: i32) -> (i32, i32, i32) {
    %c0_i32 = arith.constant 0 : i32
    %c0_i32_0 = arith.constant 0 : i32
    return %arg0, %c0_i32, %arg1 : i32, i32, i32
  }
  func.func @transform_1(%arg0: i32, %arg1: i32) -> (i32, i32) {
    %c0_i32 = arith.constant 0 : i32
    %c0_i32_0 = arith.constant 0 : i32
    %c0_i32_1 = arith.constant 0 : i32
    return %c0_i32, %c0_i32_0 : i32, i32
  }
  func.func @transform_2(%arg0: i32, %arg1: i32) -> (i32, i32) {
    %c0_i32 = arith.constant 0 : i32
    %c0_i32_0 = arith.constant 0 : i32
    %c0_i32_1 = arith.constant 0 : i32
    return %c0_i32, %c0_i32_0 : i32, i32
  }
  func.func @transform_3(%arg0: i32, %arg1: i32) -> (i32, i32, i32) {
    %c0_i32 = arith.constant 0 : i32
    %c0_i32_0 = arith.constant 0 : i32
    %c0_i32_1 = arith.constant 0 : i32
    return %arg0, %c0_i32, %c0_i32_0 : i32, i32, i32
  }
}

</mosaic_0001>

<bundles_post_ra>
// kernel: tpu_custom_call.1
= control target key start
LH: loop header
LB: loop body
LE: loop exit
PB: predicated region body
PF: predicated region fallthrough
CT: control target
= control target key end

     0   :  { %8 = vsyncpa [#allocation5], 0  ;;  %s1343_s0 = inlined_call_operand.hbm [shape: f32[2,64,256], index: 0, kind: input, shape index: {}]   ;;  %s1344_s1 = inlined_call_operand.vmem [shape: f32[64,4], index: 1, kind: input, shape index: {}]   ;;  %s1345_s2 = inlined_call_operand.vmem [shape: f32[4,64], index: 2, kind: input, shape index: {}]   ;;  %s1346_s3 = inlined_call_operand.hbm [shape: f32[2,1,64], index: 3, kind: output, shape index: {}]  }
   0x1   :  { %10 = vsyncpa [#allocation5 + $0x1], 0 }
   0x2   :  { %11 = vsyncpa [#allocation6], 0 }
   0x3   :  { %13 = vsyncpa [#allocation6 + $0x1], 0  ;;  %s1160_s12 = smov 0   ;;  %s1162_s13 = smov 0  }
   0x4   :  { %s1164_s14 = smov 0   ;;  %s1166_s15 = smov 0  }
   0x5   :  { %s1168_s16 = smov 0   ;;  %s1170_s17 = smov 0  }
   0x6 LB: > { %s939_s18 = sadd.s32 4294967295, %s1136_s17   ;;  %s940_s19 = sadd.s32 4294967294, %s1136_s17   ;;  %s1136_s17 = sphi %s1170_s17, %s19_s17   ;;  %s1132_s16 = sphi %s1168_s16, %s1355_s16   ;;  %s1128_s15 = sphi %s1166_s15, %s1354_s15   ;;  %s1124_s14 = sphi %s1164_s14, %s1353_s14   ;;  %s1120_s13 = sphi %s1162_s13, %s1352_s13   ;;  %s1116_s12 = sphi %s1160_s12, %s1351_s12  }
   0x7   : > { %s31_s20 = sadd.s32 1, %s1132_s16  ;;  %s40_s21 = sadd.s32 1, %s1124_s14 }
   0x8   : > { %p33_p0 = scmp.ge.s32.totalorder %s31_s20, 2  ;;  %p47_p1 = scmp.ne.s32.totalorder %s1124_s14, %s1120_s13 }
   0x9   : > { %p48_p2 = scmp.eq.s32.totalorder %s1136_s17, 0  ;;  %p53_p3 = scmp.ne.s32.totalorder %s1120_s13, %s1116_s12 }
   0xa   : > { %s1357_s20 = smov (%p33_p0, %s31_s20), 0  ;;  %p54_p5 = scmp.eq.s32.totalorder %s939_s18, 0 }
   0xb   : > { %p1201_p4 = por %p48_p2, %p47_p1  ;;  %s35_s23 = ssub.s32 %s1132_s16, %s1357_s20 }
   0xc   : > { %p119_p6 = scmp.eq.s32.totalorder %s939_s18, 1  ;;  %p38_p7 = scmp.eq.s32.totalorder %s35_s23, 0 }
   0xd   : > { %p1207_p8 = por %p54_p5, %p53_p3  ;;  %p125_p10 = scmp.eq.s32.totalorder %s940_s19, 1 }
   0xe   : > { %p1211_p9 = por %p119_p6, %p47_p1  ;;  %p942_p12 = scmp.ge.s32.totalorder %s1136_s17, 2 }
   0xf   : > { %s1216_s26 = scalar_select %p38_p7, %s1124_s14, %s40_s21  }
  0x10   : > { %p1218_p11 = por %p125_p10, %p53_p3  ;;  %p967_p13 = scmp.lt.s32.totalorder %s1136_s17, 2 }
  0x11   : > { %s151_s28 = sand.u32 1, %s1124_s14   ;;  %s954_s30 = sshll.u32 %s1132_s16, 7 }
  0x12   : > { %s943_s29 = sshll.u32 %s151_s28, 7  ;;  %s162_s6 = scalar_lea.hbm %s1343_s0, %s954_s30 }
  0x13   : > { %s155_s7 = scalar_lea.vmem [#allocation4], %s943_s29  ;;  %s163_s9 = sshll.u32 %s162_s6, 4  ;;  %s164_s9 = int_to_ptr.hbm [resolvable:$true] %s163_s9 }
  0x14   : > { %s165_s8 = sshll.u32 %s155_s7, 4  ;;  %p960_p0 = pnand %p967_p13, %p1201_p4  ;;  %s166_s8 = int_to_ptr.vmem [resolvable:$true] %s165_s8 }
  0x15   : > { %p946_p1 = scmp.ge.s32.totalorder %s1136_s17, 1  ;;  %s152_s10 = scalar_lea.sflag [#allocation5], %s151_s28 }
  0x16   : > { %s1138_s11 = smov 256   ;;  %s1139_s18 = smov 16  }
  0x17   : > { %962 = dma.hbm_to_vmem [thread:$0]  (!%p960_p0), %s164_s9, 2048, %s166_s8, %s152_s10, %s1138_s11, %s1138_s11, %s1139_s18  }
  0x18   : > { %p173_p2 = scmp.lt.s32.totalorder %s1136_s17, 3 }
  0x1a   : > { %p174_p3 = pnand %p946_p1, %p173_p2 }
  0x1b   : > { %s1234_s19 = sand.u32 (!%p174_p3), 1, %s1120_s13  }
  0x1c   : > { %177 = sbr.rel (%p174_p3) target bundleno = 494 (0x1ee), region = 32  ;;  %s947_s21 = sshll.u32 (!%p174_p3), %s1234_s19, 7 }
  0x1d   : > { %s180_s23 = scalar_lea.sflag (!%p174_p3), [#allocation5], %s1234_s19  ;;  %s1238_s29 = scalar_lea.vmem (!%p174_p3), [#allocation4], %s947_s21 }
  0x21   : > { %1107 = dma.done.wait (%p1207_p8), %s180_s23, 2048  }
  0x22   : > { %1109 = vsyncadd (%p1207_p8), %s180_s23, 4294965248  ;;  %v207_v0 = vld [vmem:[%s1238_s29] sm:$0xff]  ;;  %v208_v1 = vld [vmem:[%s1238_s29 + $0x8] sm:$0xff]  ;;  %v283_v41 = vlaneseq  ;;  %vm288_vm0 = vcmask 130112   ;;  %vm292_vm1 = vcmask 195712   ;;  %vm296_vm2 = vcmask 261312   ;;  %s858_s4 = scalar_lea.hbm %s1346_s3, %s1128_s15 }
  0x23   : > { %v211_v2 = vld [vmem:[%s1238_s29 + $0x20] sm:$0xff]  ;;  %v247_v3 = vmax.f32 %v207_v0, %v208_v1  ;;  %v223_v4 = vadd.f32 %v208_v1, %v207_v0  ;;  %v212_v5 = vld [vmem:[%s1238_s29 + $0x28] sm:$0xff]  ;;  %v209_v7 = vld [vmem:[%s1238_s29 + $0x10] sm:$0xff]  ;;  %vm300_vm3 = vcmask 326912   ;;  %vm304_vm4 = vcmask 392512   ;;  %s205_s5 = scalar_lea.vmem [#allocation7], %s1234_s19 }
  0x24   : > { %v229_v6 = vadd.f32 %v212_v5, %v211_v2  ;;  %v210_v8 = vld [vmem:[%s1238_s29 + $0x18] sm:$0xff]  ;;  %v253_v11 = vmax.f32 %v211_v2, %v212_v5  ;;  %v213_v12 = vld [vmem:[%s1238_s29 + $0x30] sm:$0xff]  ;;  %v215_v14 = vld [vmem:[%s1238_s29 + $0x40] sm:$0xff]  ;;  %v284_v45 = vand.u32 127, %v283_v41  ;;  %vm308_vm5 = vcmask 458112   ;;  %s860_s6 = sshll.u32 %s205_s5, 4  ;;  %s861_s6 = int_to_ptr.vmem [resolvable:$true] %s860_s6 }
  0x25   : > { %248 = vmax.xlane.f32.xlu1 %v247_v3  ;;  %224 = vadd.xlane.f32.xlu0 %v223_v4  ;;  %v250_v9 = vmax.f32 %v209_v7, %v210_v8  ;;  %v226_v10 = vadd.f32 %v210_v8, %v209_v7  ;;  %v214_v13 = vld [vmem:[%s1238_s29 + $0x38] sm:$0xff]  ;;  %v216_v15 = vld [vmem:[%s1238_s29 + $0x48] sm:$0xff]  ;;  %v217_v19 = vld [vmem:[%s1238_s29 + $0x50] sm:$0xff]  ;;  %vm312_vm6 = vcmask 523712   ;;  %vm315_vm7 = vcmask 516096   ;;  %s862_s7 = sshll.u32 %s858_s4, 4  ;;  %s863_s7 = int_to_ptr.hbm [resolvable:$true] %s862_s7 }
  0x26   : > { %230 = vadd.xlane.f32.xlu2 %v229_v6  ;;  %v256_v16 = vmax.f32 %v213_v12, %v214_v13  ;;  %v232_v17 = vadd.f32 %v214_v13, %v213_v12  ;;  %v235_v18 = vadd.f32 %v216_v15, %v215_v14  ;;  %v218_v20 = vld [vmem:[%s1238_s29 + $0x58] sm:$0xff]  ;;  %v259_v22 = vmax.f32 %v215_v14, %v216_v15  ;;  %v219_v24 = vld [vmem:[%s1238_s29 + $0x60] sm:$0xff]  ;;  %v220_v25 = vld [vmem:[%s1238_s29 + $0x68] sm:$0xff]  ;;  %s850_s15 = scalar_lea.sflag [#allocation6], %s1234_s19  ;;  %s1068_s8 = sshra.s32 %s863_s7, 4  ;;  %s1069_s8 = int_to_ptr.hbm [resolvable:$true] %s1068_s8 }
  0x27   : > { %v238_v21 = vadd.f32 %v218_v20, %v217_v19  ;;  %v262_v23 = vmax.f32 %v217_v19, %v218_v20  ;;  %v221_v26 = vld [vmem:[%s1238_s29 + $0x70] sm:$0xff]  ;;  %v222_v27 = vld [vmem:[%s1238_s29 + $0x78] sm:$0xff]  ;;  %v265_v28 = vmax.f32 %v219_v24, %v220_v25  ;;  %v241_v29 = vadd.f32 %v220_v25, %v219_v24  ;;  %v767_v40 = vld [vmem:[%s1344_s1 + $0x28] sm:$0xff]  ;;  %s1070_s9 = scalar_lea.hbm %s1069_s8, 1  ;;  %s1074_s18 = scalar_lea.hbm %s1346_s3, 2 }
  0x28   : > { %v244_v30 = vadd.f32 %v222_v27, %v221_v26  ;;  %v268_v31 = vmax.f32 %v221_v26, %v222_v27  ;;  %v769_v35 = vld [vmem:[%s1344_s1 + $0x38] sm:$0xff]  ;;  %v768_v38 = vld [vmem:[%s1344_s1 + $0x30] sm:$0xff]  ;;  %v766_v42 = vld [vmem:[%s1344_s1 + $0x20] sm:$0xff]  ;;  %v286_v50 = vadd.s32 4294967288, %v284_v45  ;;  %v294_v53 = vadd.s32 4294967272, %v284_v45  ;;  %p1071_p4 = scmp.ne.s32.totalorder %s1069_s8, %s1070_s9  ;;  %p1075_p7 = scmp.lt.s32.totalorder %s1069_s8, %s1346_s3 }
  0x29   : > { %783 = vmatpush.msra.mxu0 %v769_v35  ;;  %v765_v43 = vld [vmem:[%s1344_s1 + $0x18] sm:$0xff]  ;;  %v764_v44 = vld [vmem:[%s1344_s1 + $0x10] sm:$0xff]  ;;  %v763_v48 = vld [vmem:[%s1344_s1 + $0x8] sm:$0xff]  ;;  %v290_v54 = vadd.s32 4294967280, %v284_v45  ;;  %v298_v57 = vadd.s32 4294967264, %v284_v45  ;;  %v302_v62 = vadd.s32 4294967256, %v284_v45  ;;  %p1076_p8 = scmp.lt.s32.totalorder %s1074_s18, %s1070_s9 }
  0x2a   : > { %v762_v51 = vld [vmem:[%s1344_s1] sm:$0xff]  ;;  %v306_v0 = vadd.s32 4294967248, %v284_v45  ;;  %v310_v7 = vadd.s32 4294967240, %v284_v45  ;;  %vm760_vm8 = vcmask 1040384   ;;  %vm771_vm9 = vcmask 523264   ;;  %p1072_p5 = pnand %p1071_p4, %p1211_p9 }
  0x2b   : > { %784 = vmatpush.msra.mxu0 %v768_v38  ;;  %v770_v35 = vld [vmem:[%s1345_s2] sm:$0xf]  ;;  %vm800_vm10 = vcmask 1043456   ;;  %vm796_vm11 = vcmask 31744   ;;  %p1077_p10 = por %p1076_p8, %p1075_p7 }
  0x2c   : > { %949 = vmatpush.msk.msra.mxu1 %vm800_vm10, %v770_v35  ;;  %p1073_p6 = pneg %p1072_p5 }
  0x2d   : > { %251 = vmax.xlane.f32.xlu1 %v250_v9  ;;  %227 = vadd.xlane.f32.xlu0 %v226_v10 }
  0x2e   : > { %254 = vmax.xlane.f32.xlu2 %v253_v11  ;;  %785 = vmatpush.msra.mxu0 %v767_v40  ;;  %p1078_p13 = pnand %p1077_p10, %p1073_p6 }
  0x30   : > { %786 = vmatpush.msra.mxu0 %v766_v42 }
  0x32   : > { %787 = vmatpush.msra.mxu0 %v765_v43 }
  0x34   : > { %788 = vmatpush.msra.mxu0 %v764_v44 }
  0x35   : > { %257 = vmax.xlane.f32.xlu1 %v256_v16  ;;  %233 = vadd.xlane.f32.xlu0 %v232_v17 }
  0x36   : > { %236 = vadd.xlane.f32.xlu2 %v235_v18  ;;  %789 = vmatpush.msra.mxu0 %v763_v48 }
  0x38   : > { %790 = vmatpush.msra.mxu0 %v762_v51 }
  0x3d   : > { %239 = vadd.xlane.f32.xlu1 %v238_v21  ;;  %260 = vmax.xlane.f32.xlu0 %v259_v22 }
  0x3e   : > { %263 = vmax.xlane.f32.xlu2 %v262_v23 }
  0x45   : > { %266 = vmax.xlane.f32.xlu1 %v265_v28  ;;  %242 = vadd.xlane.f32.xlu0 %v241_v29 }
  0x46   : > { %245 = vadd.xlane.f32.xlu2 %v244_v30 }
  0x4d   : > { %269 = vmax.xlane.f32.xlu0 %v268_v31 }
  0x98   : > { %v249_v32 = vpop.xlane.xlu1 %248  ;;  %v225_v33 = vpop.xlane.xlu0 %224 }
  0x99   : > { %v231_v34 = vpop.xlane.xlu2 %230  ;;  %v285_v55 = vperm.slane %v225_v33, %v284_v45  ;;  %v325_v1 = vperm.slane %v249_v32, %v284_v45 }
  0x9a   : > { %v291_v63 = vperm.slane %v231_v34, %v290_v54 }
  0xa0   : > { %v252_v36 = vpop.xlane.xlu1 %251  ;;  %v228_v37 = vpop.xlane.xlu0 %227 }
  0xa1   : > { %v255_v39 = vpop.xlane.xlu2 %254  ;;  %v287_v52 = vperm.slane %v228_v37, %v286_v50  ;;  %v326_v2 = vperm.slane %v252_v36, %v286_v50 }
  0xa2   : > { %v328_v8 = vperm.slane %v255_v39, %v290_v54 }
  0xa3   : > { %v289_v60 = vsel %vm288_vm0, %v287_v52, %v285_v55  ;;  %v327_v10 = vsel %vm288_vm0, %v326_v2, %v325_v1 }
  0xa4   : > { %v293_v3 = vsel %vm292_vm1, %v291_v63, %v289_v60  ;;  %v329_v20 = vsel %vm292_vm1, %v328_v8, %v327_v10 }
  0xa8   : > { %v258_v46 = vpop.xlane.xlu1 %257  ;;  %v234_v47 = vpop.xlane.xlu0 %233 }
  0xa9   : > { %v237_v49 = vpop.xlane.xlu2 %236  ;;  %v295_v61 = vperm.slane %v234_v47, %v294_v53  ;;  %v330_v11 = vperm.slane %v258_v46, %v294_v53 }
  0xaa   : > { %v299_v4 = vperm.slane %v237_v49, %v298_v57 }
  0xab   : > { %v297_v5 = vsel %vm296_vm2, %v295_v61, %v293_v3  ;;  %v331_v22 = vsel %vm296_vm2, %v330_v11, %v329_v20 }
  0xac   : > { %v301_v12 = vsel %vm300_vm3, %v299_v4, %v297_v5 }
  0xb0   : > { %v261_v56 = vpop.xlane.xlu0 %260  ;;  %v240_v58 = vpop.xlane.xlu1 %239 }
  0xb1   : > { %v264_v59 = vpop.xlane.xlu2 %263  ;;  %v303_v6 = vperm.slane %v240_v58, %v302_v62  ;;  %v332_v16 = vperm.slane %v261_v56, %v298_v57 }
  0xb2   : > { %v334_v23 = vperm.slane %v264_v59, %v302_v62 }
  0xb3   : > { %v305_v15 = vsel %vm304_vm4, %v303_v6, %v301_v12  ;;  %v333_v24 = vsel %vm300_vm3, %v332_v16, %v331_v22 }
  0xb4   : > { %v335_v27 = vsel %vm304_vm4, %v334_v23, %v333_v24 }
  0xb8   : > { %v243_v9 = vpop.xlane.xlu0 %242  ;;  %v267_v18 = vpop.xlane.xlu1 %266 }
  0xb9   : > { %v307_v13 = vperm.slane %v243_v9, %v306_v0  ;;  %v246_v14 = vpop.xlane.xlu2 %245  ;;  %v336_v25 = vperm.slane %v267_v18, %v306_v0 }
  0xba   : > { %v311_v17 = vperm.slane %v246_v14, %v310_v7 }
  0xbb   : > { %v309_v19 = vsel %vm308_vm5, %v307_v13, %v305_v15  ;;  %v337_v29 = vsel %vm308_vm5, %v336_v25, %v335_v27 }
  0xbc   : > { %v313_v21 = vsel %vm312_vm6, %v311_v17, %v309_v19 }
  0xbd   : > { %316 = vst.msk [vmem:[#allocation2] sm:$0x1] %vm315_vm7, %v313_v21 }
  0xc0   : > { %v270_v26 = vpop.xlane.xlu0 %269 }
  0xc1   : > { %v338_v28 = vperm.slane %v270_v26, %v310_v7 }
  0xc3   : > { %v339_v30 = vsel %vm312_vm6, %v338_v28, %v337_v29 }
  0xc4   : > { %341 = vst.msk [vmem:[#allocation3] sm:$0x1] %vm315_vm7, %v339_v30  ;;  %v754_v31 = vld [vmem:[#allocation2] sm:$0x1] }
  0xc5   : > { %v755_v32 = vmul.f32 0.00390625, %v754_v31 }
  0xcb   : > { %v1019_v33 = vld [vmem:[#allocation3] ss:$0 sm:$0xff] }
  0xcc   : > { %v761_v34 = vsel %vm760_vm8, %v755_v32, %v1019_v33 }
  0xcd   : > { %948 = vmatmul.msk.f32.vlgmr.msra.gmra.mxu0 %vm771_vm9, %v761_v34 }
 0x14a   : > { %v792_v36 = vpop.f32.mrf.mxu0 }
 0x14b   : > { %v795_v37 = vmax.f32 %v792_v36, 0.0 }
 0x14d   : > { %950 = vmatmul.msk.f32.vlgmr.msra.gmra.mxu1 %vm796_vm11, %v795_v37 }
 0x1ca   : > { %v821_v38 = vpop.f32.mrf.mxu1 }
 0x1cb   : > { %v825_v39 = vrot.slane %v821_v38, 1 }
 0x1cd   : > { %v827_v40 = vadd.f32 %v825_v39, %v821_v38 }
 0x1cf   : > { %v951_v41 = vmul.f32 -1.442695, %v827_v40 }
 0x1d1   : > { %1020 = vpow2.f32 %v951_v41 }
 0x1d7   : > { %v1021_v42 = vpop.eup %1020 }
 0x1d8   : > { %v831_v43 = vadd.f32 1.0, %v1021_v42 }
 0x1da   : > { %1022 = vrcp.f32 %v831_v43  ;;  %v843_v47 = vand.u32 2147483648, %v831_v43  ;;  %v841_v49 = vand.u32 2147483647, %v831_v43  ;;  %vm837_vm13 = vweird.f32 %v831_v43 }
 0x1dc   : > { %v844_v51 = vor.u32 1.1754944e-38, %v843_v47  ;;  %vm842_vm15 = vcmp.eq.f32.partialorder %v841_v49, 8.507059e+37 }
 0x1e0   : > { %v1023_v44 = vpop.eup %1022 }
 0x1e1   : > { %v833_v45 = vmul.f32 %v1023_v44, %v831_v43  ;;  %vm838_vm12 = vweird.f32 %v1023_v44 }
 0x1e2   : > { %vm839_vm14 = vmor %vm837_vm13, %vm838_vm12 }
 0x1e3   : > { %v834_v46 = vsub.f32 1.0, %v833_v45 }
 0x1e5   : > { %v835_v48 = vmul.f32 %v1023_v44, %v834_v46 }
 0x1e7   : > { %v836_v50 = vadd.f32 %v1023_v44, %v835_v48 }
 0x1e9   : > { %v840_v52 = vsel %vm839_vm14, %v1023_v44, %v836_v50 }
 0x1ea   : > { %v845_v53 = vsel %vm842_vm15, %v844_v51, %v840_v52 }
 0x1eb   : > { %848 = vst.msk [vmem:[%s205_s5] sm:$0x1] %vm315_vm7, %v845_v53 }
 0x1ec   : > { %1081 = shalt.err (!%p1078_p13)
}
 0x1ed   : > { %957 = dma.vmem_to_hbm [thread:$0]  (%p1211_p9), %s861_s6, 16, %s863_s7, %s850_s15  }
 0x1ee PF: > { %s874_s19 = sand.u32 1, %s1116_s12   ;;  %p964_p0 = pnand %p942_p12, %p1218_p11 }
 0x1ef   : > { %s875_s29 = scalar_lea.sflag [#allocation6], %s874_s19 }
 0x1f0   : > { %p965_p1 = pneg %p964_p0 }
 0x1f2   : > { %1111 = dma.done.wait (%p965_p1), %s875_s29, 16  }
 0x1f3   : > { %1113 = vsyncadd (%p965_p1), %s875_s29, 4294967280  ;;  %s19_s17 = sadd.s32 1, %s1136_s17   ;;  %s1351_s12 = smov %s1120_s13 }
 0x1f4   : > { %p16_p2 = scmp.ge.s32.totalorder %s19_s17, 4   ;;  %s1352_s13 = smov %s1124_s14 }
 0x1f5   : > { %s1353_s14 = smov %s1216_s26  ;;  %s1354_s15 = smov %s1132_s16 }
 0x1f6   : > { %s1355_s16 = smov %s1357_s20  ;;  %18 = sbr.rel (!%p16_p2) target bundleno = 6 (0x6), region = 103 }
 0x1fb   :  { %880 = vsyncpa [#allocation5], 1 }
 0x1fc   :  { %882 = vsyncpa [#allocation5 + $0x1], 1 }
 0x1fd   :  { %883 = vsyncpa [#allocation6], 1 }
 0x1fe   :  { %885 = vsyncpa [#allocation6 + $0x1], 1 }

</bundles_post_ra>
